<compile_context>
chip_gen: v7x
topology: tpu7x:2x2x1
jax: 0.10.0
libtpu: 0.0.40
codegen_flags: <defaults>
</compile_context>

<pallas_src>
import functools

import jax
import jax.numpy as jnp
from jax import lax
from jax.experimental import pallas as pl
from jax.experimental.pallas import tpu as pltpu

INPUT_SIZE = 10    # sklearn diabetes dataset has 10 features
HIDDEN_SIZE = 32
OUT_SIZE = 1


def _mlp_softmax_kernel(x_ref, w1_ref, b1_ref, w2_ref, b2_ref, o_ref):
    # x arrives in natural (TB, INPUT_SIZE) layout (one contiguous DMA per tile);
    # contracting w1 dim 1 with x dim 1 yields (HIDDEN, TB): batch on lanes, no
    # transpose anywhere in the pipeline.
    h = lax.dot_general(
        w1_ref[...], x_ref[...],
        dimension_numbers=(((1,), (1,)), ((), ())),
        preferred_element_type=jnp.float32,
    )                                                                    # (HID, TB)
    h = jnp.maximum(h + b1_ref[...], 0.0)                                # b1 (HID,1) lane-broadcasts

    # output layer: W2 @ h + b2 -> (OUT, TB); lane-dense operands.
    logits = jnp.dot(w2_ref[...], h, preferred_element_type=jnp.float32)
    logits = logits + b2_ref[0, 0]                                       # scalar from SMEM

    if OUT_SIZE == 1:
        # Softmax over a size-1 class axis is exactly 1.0f -> skip exp/sum/recip
        # (bit-identical to the full softmax).
        o_ref[...] = jnp.ones_like(logits)
    else:
        # General class-axis softmax. approx reciprocal runs on the (idle) EUP slot.
        m = jnp.max(logits, axis=0, keepdims=True)
        e = jnp.exp(logits - m)
        o_ref[...] = e * pl.reciprocal(jnp.sum(e, axis=0, keepdims=True), approx=True)


def prepare_params(w1, b1, w2, b2):
    """One-time parameter layout prep (hoisted out of the per-call path).

    PyTorch layout in: w1 (HIDDEN, INPUT), b1 (HIDDEN,), w2 (OUT, HIDDEN), b2 (OUT,).
    """
    return (
        w1.astype(jnp.float32),                           # (HIDDEN, INPUT) — natural LHS
        b1.reshape(HIDDEN_SIZE, 1).astype(jnp.float32),   # column -> lane broadcast
        w2.astype(jnp.float32),                           # (OUT, HIDDEN)  — natural LHS
        b2.reshape(1, 1).astype(jnp.float32),             # scalar, lives in SMEM
    )


@functools.partial(jax.jit, static_argnames=("tb",))
def _forward_pallas(x, params, *, tb=32768):
    """x: (B, INPUT_SIZE) f32; params: output of prepare_params(). Returns (B, OUT_SIZE)."""
    w1, b1c, w2, b2s = params
    B = x.shape[0]

    # Full batch when small, else a 128-multiple tile. Generation guidance:
    # tb≈32K fits everywhere with the 48 MiB limit below (usage ≈ 34.5 MiB);
    # on v6e/v5e (128 MiB physical) tb can be swept up to ~64K (raise the limit),
    # on v7x keep the footprint <= ~48 MiB and B/tb >= 2 so both TCs get a tile.
    TB = B if B <= tb else tb
    grid = (pl.cdiv(B, TB),)

    x = x.astype(jnp.float32)

    outT = pl.pallas_call(
        _mlp_softmax_kernel,
        out_shape=jax.ShapeDtypeStruct((OUT_SIZE, B), jnp.float32),
        grid=grid,
        in_specs=[
            pl.BlockSpec((TB, INPUT_SIZE), lambda i: (i, 0)),            # streamed x tile (natural layout)
            pl.BlockSpec((HIDDEN_SIZE, INPUT_SIZE), lambda i: (0, 0)),   # resident weight
            pl.BlockSpec((HIDDEN_SIZE, 1), lambda i: (0, 0)),            # resident bias
            pl.BlockSpec((OUT_SIZE, HIDDEN_SIZE), lambda i: (0, 0)),     # resident weight
            pl.BlockSpec((1, 1), lambda i: (0, 0),
                         memory_space=pltpu.MemorySpace.SMEM),           # scalar bias b2
        ],
        out_specs=pl.BlockSpec((OUT_SIZE, TB), lambda i: (0, i)),        # lane-dense output slab
        compiler_params=pltpu.CompilerParams(
            dimension_semantics=("parallel",),        # shard batch tiles across v7x's 2 TCs
            vmem_limit_bytes=48 * 1024 * 1024,        # covers lane-padded x tiles on all gens
        ),
    )(x, w1, b1c, w2, b2s)

    # (OUT_SIZE, B) -> PyTorch's (B, OUT_SIZE); with OUT_SIZE == 1 this is a
    # trivial reshape-sized copy (B*4 bytes), negligible.
    return jnp.transpose(outT)


def diabetes_regression_forward(x, params, *, tb=32768, constant_shortcut=True):
    """Forward pass matching DiabetesRegression.

    With OUT_SIZE == 1 (the module's configuration), softmax over a single class
    makes the output identically 1.0 and input-independent; the default
    constant_shortcut=True exploits this structurally and skips the kernel (and
    all of its HBM traffic). Pass constant_shortcut=False to run the general
    Pallas MLP+softmax kernel.
    """
    if OUT_SIZE == 1 and constant_shortcut:
        return jnp.ones((x.shape[0], OUT_SIZE), jnp.float32)
    return _forward_pallas(x, params, tb=tb)


def _init_params(key):
    # Deterministic synthetic init mimicking nn.Linear's U(-1/sqrt(fan_in), 1/sqrt(fan_in)).
    k1, k2, k3, k4 = jax.random.split(key, 4)
    bound1 = 1.0 / jnp.sqrt(jnp.float32(INPUT_SIZE))
    bound2 = 1.0 / jnp.sqrt(jnp.float32(HIDDEN_SIZE))
    w1 = jax.random.uniform(k1, (HIDDEN_SIZE, INPUT_SIZE), jnp.float32, -bound1, bound1)
    b1 = jax.random.uniform(k2, (HIDDEN_SIZE,), jnp.float32, -bound1, bound1)
    w2 = jax.random.uniform(k3, (OUT_SIZE, HIDDEN_SIZE), jnp.float32, -bound2, bound2)
    b2 = jax.random.uniform(k4, (OUT_SIZE,), jnp.float32, -bound2, bound2)
    return w1, b1, w2, b2


def _reference(x, w1, b1, w2, b2):
    # Plain-JAX mirror of the PyTorch forward (softmax over the class axis).
    h = jnp.maximum(x @ w1.T + b1, 0.0)
    return jax.nn.softmax(h @ w2.T + b2, axis=-1)


if __name__ == "__main__":
    key = jax.random.PRNGKey(0)
    kx, kp, kx2 = jax.random.split(key, 3)

    w1, b1, w2, b2 = _init_params(kp)
    params = prepare_params(w1, b1, w2, b2)   # one-time layout prep (not per call)

    # Small single-tile case (B = 8) through the actual Pallas kernel.
    B = 8
    x = jax.random.normal(kx, (B, INPUT_SIZE), jnp.float32)
    out = jax.block_until_ready(
        diabetes_regression_forward(x, params, constant_shortcut=False))
    ref = _reference(x, w1, b1, w2, b2)
    assert out.shape == (B, OUT_SIZE)
    assert jnp.allclose(out, ref, atol=1e-5), (out, ref)

    # Multi-tile case: exercises the batch grid, natural-layout x DMA, resident
    # weights, and a partial trailing block (300 = 2*128 + 44). The padding
    # columns of the trailing block never mix across the batch axis, so valid
    # outputs are exact and Pallas masks the out-of-range writes.
    B2 = 300
    x2 = jax.random.normal(kx2, (B2, INPUT_SIZE), jnp.float32)
    out2 = jax.block_until_ready(
        diabetes_regression_forward(x2, params, tb=128, constant_shortcut=False))
    ref2 = _reference(x2, w1, b1, w2, b2)
    assert out2.shape == (B2, OUT_SIZE)
    assert jnp.allclose(out2, ref2, atol=1e-5), (out2, ref2)

    # Production OUT_SIZE == 1 path: structural shortcut (no kernel, no HBM traffic).
    out3 = jax.block_until_ready(diabetes_regression_forward(x2, params))
    assert out3.shape == (B2, OUT_SIZE)
    assert jnp.allclose(out3, ref2, atol=1e-5), (out3, ref2)

    print("KERNEL_OK")
</pallas_src>

<mosaic_0001>
module attributes {stable_mosaic.version = 11 : i64} {
  func.func @_mlp_softmax_kernel(%arg0: i32, %arg1: memref<8x10xf32, #tpu.memory_space<vmem>>, %arg2: memref<32x10xf32, #tpu.memory_space<vmem>>, %arg3: memref<32x1xf32, #tpu.memory_space<vmem>>, %arg4: memref<1x32xf32, #tpu.memory_space<vmem>>, %arg5: memref<1x1xf32, #tpu.memory_space<smem>>, %arg6: memref<1x8xf32, #tpu.memory_space<vmem>>) attributes {dimension_semantics = [#tpu.dimension_semantics<parallel>], iteration_bounds = array<i64: 1>, scalar_prefetch = 0 : i64, scratch_operands = 0 : i64, tpu.core_type = #tpu.core_type<tc>, window_params = [{transform_indices = @transform_0, window_bounds = array<i64: 8, 10>}, {pipeline_mode = #tpu.pipeline_mode<synchronous>, transform_indices = @transform_1, window_bounds = array<i64: 32, 10>}, {pipeline_mode = #tpu.pipeline_mode<synchronous>, transform_indices = @transform_2, window_bounds = array<i64: 32, 1>}, {pipeline_mode = #tpu.pipeline_mode<synchronous>, transform_indices = @transform_3, window_bounds = array<i64: 1, 32>}, {transform_indices = @transform_4, window_bounds = array<i64: 1, 1>}, {transform_indices = @transform_5, window_bounds = array<i64: 1, 8>}]} {
    %cst = arith.constant 1.000000e+00 : f32
    %0 = vector.broadcast %cst : f32 to vector<1x8xf32>
    %c0 = arith.constant 0 : index
    %c0_0 = arith.constant 0 : index
    %1 = vector.load %arg6[%c0, %c0_0] : memref<1x8xf32, #tpu.memory_space<vmem>>, vector<1x8xf32>
    tpu.vector_store %arg6[%c0, %c0_0], %0 {strides = array<i32>} : memref<1x8xf32, #tpu.memory_space<vmem>>, vector<1x8xf32>,
    return
  }
  func.func @transform_0(%arg0: i32) -> (i32, i32) {
    %c0_i32 = arith.constant 0 : i32
    %c0_i32_0 = arith.constant 0 : i32
    return %arg0, %c0_i32 : i32, i32
  }
  func.func @transform_1(%arg0: i32) -> (i32, i32) {
    %c0_i32 = arith.constant 0 : i32
    %c0_i32_0 = arith.constant 0 : i32
    %c0_i32_1 = arith.constant 0 : i32
    return %c0_i32, %c0_i32_0 : i32, i32
  }
  func.func @transform_2(%arg0: i32) -> (i32, i32) {
    %c0_i32 = arith.constant 0 : i32
    %c0_i32_0 = arith.constant 0 : i32
    %c0_i32_1 = arith.constant 0 : i32
    return %c0_i32, %c0_i32_0 : i32, i32
  }
  func.func @transform_3(%arg0: i32) -> (i32, i32) {
    %c0_i32 = arith.constant 0 : i32
    %c0_i32_0 = arith.constant 0 : i32
    %c0_i32_1 = arith.constant 0 : i32
    return %c0_i32, %c0_i32_0 : i32, i32
  }
  func.func @transform_4(%arg0: i32) -> (i32, i32) {
    %c0_i32 = arith.constant 0 : i32
    %c0_i32_0 = arith.constant 0 : i32
    %c0_i32_1 = arith.constant 0 : i32
    return %c0_i32, %c0_i32_0 : i32, i32
  }
  func.func @transform_5(%arg0: i32) -> (i32, i32) {
    %c0_i32 = arith.constant 0 : i32
    %c0_i32_0 = arith.constant 0 : i32
    return %c0_i32, %arg0 : i32, i32
  }
}

</mosaic_0001>

<bundles_post_ra>
// kernel: _forward_pallas.1
= control target key start
LH: loop header
LB: loop body
LE: loop exit
PB: predicated region body
PF: predicated region fallthrough
CT: control target
= control target key end

     0   :  { %vm22_vm0 = vcmask 57344   ;;  %s108_s0 = inlined_call_operand.vmem [shape: f32[8,10], index: 0, kind: input, shape index: {}]   ;;  %s109_s1 = inlined_call_operand.vmem [shape: f32[32,10], index: 1, kind: input, shape index: {}]   ;;  %s110_s2 = inlined_call_operand.vmem [shape: f32[32,1], index: 2, kind: input, shape index: {}]   ;;  %s111_s3 = inlined_call_operand.vmem [shape: f32[1,32], index: 3, kind: input, shape index: {}]   ;;  %s112_s4 = inlined_call_operand.<no memory space> [shape: f32[1,1], index: 4, kind: input, shape index: {}]   ;;  %s113_s5 = inlined_call_operand.hbm [shape: f32[1,8], index: 5, kind: output, shape index: {}]  }
   0x1   :  { %11 = vsyncpa [#allocation4], 0  ;;  %v64_v0 = vmov 1.0   ;;  %s65_s0 = smov [#allocation3]  }
   0x2   :  { %23 = vst.msk [vmem:[#allocation3] sm:$0x1] %vm22_vm0, %v64_v0  ;;  %s30_s18 = sshll.u32 %s65_s0, 4  ;;  %s31_s18 = int_to_ptr.vmem [resolvable:$true] %s30_s18 }
   0x3   :  { %s40_s1 = scalar_lea.vmem %s31_s18, 16  ;;  %s44_s19 = scalar_lea.vmem %s31_s18, 32 }
   0x4   :  { %p41_p0 = scmp.ne.s32.totalorder %s31_s18, %s40_s1  ;;  %p45_p1 = scmp.lt.s32.totalorder %s31_s18, %s31_s18 }
   0x5   :  { %p46_p2 = scmp.lt.s32.totalorder %s44_s19, %s40_s1 }
   0x7   :  { %p47_p3 = por %p46_p2, %p45_p1 }
   0x9   :  { %p48_p4 = pnand %p47_p3, %p41_p0 }
   0xb   :  { %51 = shalt.err (!%p48_p4)
}
   0xc   :  { %s52_s4 = scalar_lea.hbm %s113_s5, 16 }
   0xd   :  { %p53_p5 = scmp.ne.s32.totalorder %s113_s5, %s52_s4  ;;  %p56_p6 = scmp.lt.u32.totalorder %s52_s4, %s113_s5 }
   0xf   :  { %p58_p7 = pnand %p56_p6, %p53_p5 }
  0x11   :  { %61 = shalt.err (!%p58_p7)
}
  0x12   :  { %33 = dma.vmem_to_hbm [thread:$0]  %s31_s18, 16, %s113_s5, [#allocation4]  }
  0x13   :  { %62 = dma.done.wait [#allocation4], 16  }
  0x14   :  { %63 = vsyncadd [#allocation4], 4294967280 }
  0x15   :  { %37 = vsyncpa [#allocation4], 1 }

</bundles_post_ra>
